<compile_context>
chip_gen: v6e
topology: v6e:2x2x1
jax: 0.10.0
libtpu: 0.0.40
codegen_flags: <defaults>
</compile_context>

<pallas_src>
import functools

import jax
import jax.numpy as jnp
from jax import lax
from jax.experimental import pallas as pl
from jax.experimental.pallas import tpu as pltpu


def _round_up(x, m):
    return (x + m - 1) // m * m


def vertex_update_high_kernel(edge_ref, node_ref, w1n_ref, w1a_ref, b1_ref,
                              w2_ref, b2_ref, out_ref, *, n_s):
    # edge_ref: (TB, N_sq, N_sq)  -- lanes >= n_s are zero (padded in wrapper)
    # node_ref: (TB, N_sq, D)
    e = edge_ref[...]
    node = node_ref[...]
    tb, n_sq, _ = e.shape
    d = node.shape[-1]

    # Zero the diagonal.  Rows >= n_s hit already-zero padded lanes, so this
    # exactly matches the reference mask (eye(N_s) stacked on zeros).
    row = lax.broadcasted_iota(jnp.int32, (n_sq, n_sq), 0)
    col = lax.broadcasted_iota(jnp.int32, (n_sq, n_sq), 1)
    e = jnp.where((row == col)[None], jnp.float32(0.0), e)

    # F.normalize(x, p=1, dim=-1): x / max(sum(|x|), 1e-12).
    # Padded zero lanes contribute nothing to the sum.
    l1 = jnp.sum(jnp.abs(e), axis=-1, keepdims=True)
    edge_feat = e / jnp.maximum(l1, jnp.float32(1e-12))      # (TB, N_sq, N_sq)

    # Fused aggregation (no transpose materialization, no concat):
    #  - rows >= n_s come from edge_feat @ node   (padded cols kill node[n_s:])
    #  - rows <  n_s come from edge_feat^T @ node (handled by the contraction)
    aggr_all = jnp.einsum('tij,tjd->tid', edge_feat, node,
                          preferred_element_type=jnp.float32)  # (TB, N_sq, D)
    aggr_sup = jnp.einsum('tji,tjd->tid', edge_feat, node,
                          preferred_element_type=jnp.float32)  # (TB, N_sq, D)
    is_sup = lax.broadcasted_iota(jnp.int32, (n_sq, d), 0) < n_s
    aggr = jnp.where(is_sup[None], aggr_sup, aggr_all)          # (TB, N_sq, D)

    # Flatten timesteps into the matmul M dimension.
    node_f = node.reshape(tb * n_sq, d)
    aggr_f = aggr.reshape(tb * n_sq, d)

    # conv1 (1x1, BN folded) as split matmul (kills the lane concat) + LeakyReLU.
    h1 = (jnp.dot(node_f, w1n_ref[...], preferred_element_type=jnp.float32)
          + jnp.dot(aggr_f, w1a_ref[...], preferred_element_type=jnp.float32)
          + b1_ref[...])
    h1 = jnp.where(h1 >= 0, h1, jnp.float32(0.01) * h1)

    # conv2 (1x1, BN folded) + LeakyReLU.
    h2 = jnp.dot(h1, w2_ref[...], preferred_element_type=jnp.float32) + b2_ref[...]
    h2 = jnp.where(h2 >= 0, h2, jnp.float32(0.01) * h2)

    out_ref[...] = h2.reshape(tb, n_sq, -1).astype(out_ref.dtype)


def _choose_tb(T, N_sq, bytes_per_row, *, min_rows=256, max_rows=2048,
               vmem_budget=8 * 1024 * 1024):
    """Pick timesteps-per-block: big enough to fill the MXU M dim, small
    enough for double-buffered blocks to fit comfortably in scoped VMEM,
    and (when possible) leaving >= 2 grid steps for v7x's two TensorCores."""
    divs = [d for d in range(1, T + 1) if T % d == 0]

    def fits(d):
        rows = d * N_sq
        return rows <= max_rows and 2 * rows * bytes_per_row <= vmem_budget

    cands = [d for d in divs if fits(d)] or [1]
    multi = [d for d in cands if T // d >= 2] or cands
    good = [d for d in multi if d * N_sq >= min_rows]
    return min(good) if good else max(multi)


def vertex_update_high(edge_feature_low, node_feature_high, w1, b1, w2, b2,
                       *, block_t=None):
    """edge_feature_low: (T, N_sq, N_s); node_feature_high: (T, N_sq, D).
    w1: (Cin=2D, C2) with BN1 scale folded; b1: (1, C2);
    w2: (C2, Cout) with BN2 scale folded;  b2: (1, Cout)."""
    T, N_sq, N_s = edge_feature_low.shape
    D = node_feature_high.shape[-1]
    Cin, C2 = w1.shape
    Cout = w2.shape[-1]
    assert Cin == 2 * D

    # Pad channel dims to multiples of 128: lane-dense intermediates and an
    # unmasked, lane-dense output store.  Padded channels stay exactly zero.
    C2p = _round_up(C2, 128)
    Coutp = _round_up(Cout, 128)
    w1n = jnp.pad(w1[:D], ((0, 0), (0, C2p - C2)))
    w1a = jnp.pad(w1[D:], ((0, 0), (0, C2p - C2)))
    b1p = jnp.pad(b1, ((0, 0), (0, C2p - C2)))
    w2p = jnp.pad(w2, ((0, C2p - C2), (0, Coutp - Cout)))
    b2p = jnp.pad(b2, ((0, 0), (0, Coutp - Cout)))

    # Zero-pad the edge lanes N_s -> N_sq so the in-kernel aggregation is a
    # pair of clean batched contractions (no slice / transpose / concat).
    edge_pad = jnp.pad(edge_feature_low, ((0, 0), (0, 0), (0, N_sq - N_s)))

    bytes_per_row = 4 * (N_sq + D + Coutp)
    TB = block_t if block_t is not None else _choose_tb(T, N_sq, bytes_per_row)
    assert T % TB == 0, (T, TB)

    kernel = functools.partial(vertex_update_high_kernel, n_s=N_s)

    grid_spec = pltpu.PrefetchScalarGridSpec(
        num_scalar_prefetch=0,
        grid=(T // TB,),
        in_specs=[
            pl.BlockSpec((TB, N_sq, N_sq), lambda t: (t, 0, 0)),
            pl.BlockSpec((TB, N_sq, D), lambda t: (t, 0, 0)),
            pl.BlockSpec((D, C2p), lambda t: (0, 0)),      # weights stay resident
            pl.BlockSpec((D, C2p), lambda t: (0, 0)),
            pl.BlockSpec((1, C2p), lambda t: (0, 0)),
            pl.BlockSpec((C2p, Coutp), lambda t: (0, 0)),
            pl.BlockSpec((1, Coutp), lambda t: (0, 0)),
        ],
        out_specs=pl.BlockSpec((TB, N_sq, Coutp), lambda t: (t, 0, 0)),
    )
    out_p = pl.pallas_call(
        kernel,
        out_shape=jax.ShapeDtypeStruct((T, N_sq, Coutp), jnp.float32),
        grid_spec=grid_spec,
        compiler_params=pltpu.CompilerParams(
            dimension_semantics=("parallel",)),
    )(edge_pad, node_feature_high, w1n, w1a, b1p, w2p, b2p)
    return out_p[:, :, :Cout]


def reference_forward(edge_feature_low, node_feature_high, w1, b1, w2, b2):
    """Pure-JAX reference matching the PyTorch forward (with folded BN)."""
    T, N_sq, N_s = edge_feature_low.shape
    eye = jnp.eye(N_s, dtype=jnp.float32)
    mask = jnp.concatenate([eye, jnp.zeros((N_sq - N_s, N_s))], axis=0)
    e = edge_feature_low * (1.0 - mask)[None]
    l1 = jnp.sum(jnp.abs(e), axis=-1, keepdims=True)
    edge_feat = e / jnp.maximum(l1, 1e-12)
    aggr_all = jnp.einsum('tij,tjd->tid', edge_feat,
                          node_feature_high[:, :N_s, :])
    aggr_sup = jnp.einsum('tji,tjd->tid', edge_feat, node_feature_high)
    aggr_all = aggr_all.at[:, :N_s, :].set(aggr_sup)
    in_feat = jnp.concatenate([node_feature_high, aggr_all], axis=-1)
    h1 = jnp.einsum('tnc,ck->tnk', in_feat, w1) + b1[None]
    h1 = jnp.where(h1 >= 0, h1, 0.01 * h1)
    h2 = jnp.einsum('tnc,ck->tnk', h1, w2) + b2[None]
    h2 = jnp.where(h2 >= 0, h2, 0.01 * h2)
    return h2


if __name__ == "__main__":
    key = jax.random.PRNGKey(0)
    T, N_s, N_q, D = 8, 8, 8, 16          # N_sq = 16, Cin = 2*D = 32
    N_sq = N_s + N_q
    Cin, Cout = 2 * D, 16
    C2 = 2 * Cout

    keys = jax.random.split(key, 12)
    edge = jax.random.uniform(keys[0], (T, N_sq, N_s), jnp.float32)
    node = jax.random.normal(keys[1], (T, N_sq, D), jnp.float32)

    # Conv weights (PyTorch shape (Cout, Cin, 1, 1) -> squeezed)
    conv1_w = jax.random.normal(keys[2], (C2, Cin), jnp.float32) * 0.1
    conv2_w = jax.random.normal(keys[3], (Cout, C2), jnp.float32) * 0.1
    # BatchNorm params / running stats (eval mode), deterministic
    g1 = 1.0 + 0.1 * jax.random.normal(keys[4], (C2,), jnp.float32)
    bt1 = 0.1 * jax.random.normal(keys[5], (C2,), jnp.float32)
    m1 = 0.05 * jax.random.normal(keys[6], (C2,), jnp.float32)
    v1 = 1.0 + 0.1 * jax.random.uniform(keys[7], (C2,), jnp.float32)
    g2 = 1.0 + 0.1 * jax.random.normal(keys[8], (Cout,), jnp.float32)
    bt2 = 0.1 * jax.random.normal(keys[9], (Cout,), jnp.float32)
    m2 = 0.05 * jax.random.normal(keys[10], (Cout,), jnp.float32)
    v2 = 1.0 + 0.1 * jax.random.uniform(keys[11], (Cout,), jnp.float32)

    eps = 1e-5
    s1 = g1 / jnp.sqrt(v1 + eps)
    s2 = g2 / jnp.sqrt(v2 + eps)
    # Fold BN scale into conv weights; transpose to (Cin, Cout) for x @ W.
    w1 = (conv1_w * s1[:, None]).T            # (Cin, C2)
    b1 = (bt1 - m1 * s1)[None, :]             # (1, C2)
    w2 = (conv2_w * s2[:, None]).T            # (C2, Cout)
    b2 = (bt2 - m2 * s2)[None, :]             # (1, Cout)

    out = vertex_update_high(edge, node, w1, b1, w2, b2)
    out = jax.block_until_ready(out)

    ref = reference_forward(edge, node, w1, b1[0], w2, b2[0])
    assert out.shape == (T, N_sq, Cout)
    assert jnp.allclose(out, ref, atol=1e-4, rtol=1e-4), \
        float(jnp.max(jnp.abs(out - ref)))

    print("KERNEL_OK")
</pallas_src>

<mosaic_0001>
module attributes {stable_mosaic.version = 11 : i64} {
  func.func @vertex_update_high_kernel(%arg0: i32, %arg1: memref<4x16x16xf32, #tpu.memory_space<vmem>>, %arg2: memref<4x16x16xf32, #tpu.memory_space<vmem>>, %arg3: memref<16x128xf32, #tpu.memory_space<vmem>>, %arg4: memref<16x128xf32, #tpu.memory_space<vmem>>, %arg5: memref<1x128xf32, #tpu.memory_space<vmem>>, %arg6: memref<128x128xf32, #tpu.memory_space<vmem>>, %arg7: memref<1x128xf32, #tpu.memory_space<vmem>>, %arg8: memref<4x16x128xf32, #tpu.memory_space<vmem>>) attributes {dimension_semantics = [#tpu.dimension_semantics<parallel>], iteration_bounds = array<i64: 2>, scalar_prefetch = 0 : i64, scratch_operands = 0 : i64, tpu.core_type = #tpu.core_type<tc>, window_params = [{transform_indices = @transform_0, window_bounds = array<i64: 4, 16, 16>}, {transform_indices = @transform_1, window_bounds = array<i64: 4, 16, 16>}, {pipeline_mode = #tpu.pipeline_mode<synchronous>, transform_indices = @transform_2, window_bounds = array<i64: 16, 128>}, {pipeline_mode = #tpu.pipeline_mode<synchronous>, transform_indices = @transform_3, window_bounds = array<i64: 16, 128>}, {pipeline_mode = #tpu.pipeline_mode<synchronous>, transform_indices = @transform_4, window_bounds = array<i64: 1, 128>}, {pipeline_mode = #tpu.pipeline_mode<synchronous>, transform_indices = @transform_5, window_bounds = array<i64: 128, 128>}, {pipeline_mode = #tpu.pipeline_mode<synchronous>, transform_indices = @transform_6, window_bounds = array<i64: 1, 128>}, {transform_indices = @transform_7, window_bounds = array<i64: 4, 16, 128>}]} {
    %c0 = arith.constant 0 : index
    %c0_0 = arith.constant 0 : index
    %c0_1 = arith.constant 0 : index
    %0 = vector.load %arg1[%c0, %c0_0, %c0_1] : memref<4x16x16xf32, #tpu.memory_space<vmem>>, vector<4x16x16xf32>
    %c0_2 = arith.constant 0 : index
    %c0_3 = arith.constant 0 : index
    %c0_4 = arith.constant 0 : index
    %1 = vector.load %arg2[%c0_2, %c0_3, %c0_4] : memref<4x16x16xf32, #tpu.memory_space<vmem>>, vector<4x16x16xf32>
    %2 = tpu.iota {dimensions = array<i32: 0>} : vector<16x16xi32>
    %3 = tpu.iota {dimensions = array<i32: 1>} : vector<16x16xi32>
    %4 = arith.cmpi eq, %2, %3 : vector<16x16xi32>
    %5 = vector.shape_cast %4 : vector<16x16xi1> to vector<1x16x16xi1>
    %cst = arith.constant 0.000000e+00 : f32
    %6 = vector.shape_cast %5 : vector<1x16x16xi1> to vector<1x16x16xi1>
    %7 = vector.broadcast %6 : vector<1x16x16xi1> to vector<4x16x16xi1>
    %8 = vector.broadcast %cst : f32 to vector<4x16x16xf32>
    %9 = arith.select %7, %8, %0 : vector<4x16x16xi1>, vector<4x16x16xf32>
    %10 = math.absf %9 : vector<4x16x16xf32>
    %cst_5 = arith.constant dense<0.000000e+00> : vector<4x16xf32>
    %11 = vector.multi_reduction <add>, %10, %cst_5 [2] : vector<4x16x16xf32> to vector<4x16xf32>
    %12 = vector.shape_cast %11 : vector<4x16xf32> to vector<4x16x1xf32>
    %cst_6 = arith.constant 9.99999996E-13 : f32
    %13 = vector.broadcast %cst_6 : f32 to vector<4x16x1xf32>
    %14 = arith.maximumf %12, %13 : vector<4x16x1xf32>
    %15 = vector.broadcast %14 : vector<4x16x1xf32> to vector<4x16x16xf32>
    %16 = arith.divf %9, %15 : vector<4x16x16xf32>
    "tpu.trace_start"() <{level = 10 : i32, message = "tij,tjd->tid"}> : () -> ()
    %cst_7 = arith.constant dense<0.000000e+00> : vector<4x16x16xf32>
    %17 = tpu.matmul %16, %1, %cst_7 {dimension_numbers = #tpu.dot_dimension_numbers<[2], [1], [1], [2], [0, 0, 0, 1, 1, 2], [0], [0]>} : vector<4x16x16xf32>, vector<4x16x16xf32>, vector<4x16x16xf32> -> vector<4x16x16xf32>
    "tpu.trace_stop"() : () -> ()
    "tpu.trace_start"() <{level = 10 : i32, message = "tji,tjd->tid"}> : () -> ()
    %cst_8 = arith.constant dense<0.000000e+00> : vector<4x16x16xf32>
    %18 = tpu.matmul %16, %1, %cst_8 {dimension_numbers = #tpu.dot_dimension_numbers<[1], [1], [2], [2], [0, 0, 0, 2, 1, 2], [0], [0]>} : vector<4x16x16xf32>, vector<4x16x16xf32>, vector<4x16x16xf32> -> vector<4x16x16xf32>
    "tpu.trace_stop"() : () -> ()
    %19 = tpu.iota {dimensions = array<i32: 0>} : vector<16x16xi32>
    %c8_i32 = arith.constant 8 : i32
    %20 = vector.broadcast %c8_i32 : i32 to vector<16x16xi32>
    %21 = arith.cmpi slt, %19, %20 : vector<16x16xi32>
    %22 = vector.shape_cast %21 : vector<16x16xi1> to vector<1x16x16xi1>
    %23 = vector.shape_cast %22 : vector<1x16x16xi1> to vector<1x16x16xi1>
    %24 = vector.broadcast %23 : vector<1x16x16xi1> to vector<4x16x16xi1>
    %25 = arith.select %24, %18, %17 : vector<4x16x16xi1>, vector<4x16x16xf32>
    %26 = vector.shape_cast %1 : vector<4x16x16xf32> to vector<64x16xf32>
    %27 = vector.shape_cast %25 : vector<4x16x16xf32> to vector<64x16xf32>
    %c0_9 = arith.constant 0 : index
    %c0_10 = arith.constant 0 : index
    %28 = vector.load %arg3[%c0_9, %c0_10] : memref<16x128xf32, #tpu.memory_space<vmem>>, vector<16x128xf32>
    %cst_11 = arith.constant dense<0.000000e+00> : vector<64x128xf32>
    %29 = tpu.matmul %26, %28, %cst_11 {dimension_numbers = #tpu.dot_dimension_numbers<[1], [0], [0], [1], [0, 0, 1, 1], [], []>} : vector<64x16xf32>, vector<16x128xf32>, vector<64x128xf32> -> vector<64x128xf32>
    %c0_12 = arith.constant 0 : index
    %c0_13 = arith.constant 0 : index
    %30 = vector.load %arg4[%c0_12, %c0_13] : memref<16x128xf32, #tpu.memory_space<vmem>>, vector<16x128xf32>
    %cst_14 = arith.constant dense<0.000000e+00> : vector<64x128xf32>
    %31 = tpu.matmul %27, %30, %cst_14 {dimension_numbers = #tpu.dot_dimension_numbers<[1], [0], [0], [1], [0, 0, 1, 1], [], []>} : vector<64x16xf32>, vector<16x128xf32>, vector<64x128xf32> -> vector<64x128xf32>
    %32 = arith.addf %29, %31 : vector<64x128xf32>
    %c0_15 = arith.constant 0 : index
    %c0_16 = arith.constant 0 : index
    %33 = vector.load %arg5[%c0_15, %c0_16] : memref<1x128xf32, #tpu.memory_space<vmem>>, vector<1x128xf32>
    %34 = vector.broadcast %33 : vector<1x128xf32> to vector<64x128xf32>
    %35 = arith.addf %32, %34 : vector<64x128xf32>
    %cst_17 = arith.constant 0.000000e+00 : f32
    %36 = vector.broadcast %cst_17 : f32 to vector<64x128xf32>
    %37 = arith.cmpf oge, %35, %36 : vector<64x128xf32>
    %cst_18 = arith.constant 0.00999999977 : f32
    %38 = vector.broadcast %cst_18 : f32 to vector<64x128xf32>
    %39 = arith.mulf %38, %35 : vector<64x128xf32>
    %40 = arith.select %37, %35, %39 : vector<64x128xi1>, vector<64x128xf32>
    %c0_19 = arith.constant 0 : index
    %c0_20 = arith.constant 0 : index
    %41 = vector.load %arg6[%c0_19, %c0_20] : memref<128x128xf32, #tpu.memory_space<vmem>>, vector<128x128xf32>
    %cst_21 = arith.constant dense<0.000000e+00> : vector<64x128xf32>
    %42 = tpu.matmul %40, %41, %cst_21 {dimension_numbers = #tpu.dot_dimension_numbers<[1], [0], [0], [1], [0, 0, 1, 1], [], []>} : vector<64x128xf32>, vector<128x128xf32>, vector<64x128xf32> -> vector<64x128xf32>
    %c0_22 = arith.constant 0 : index
    %c0_23 = arith.constant 0 : index
    %43 = vector.load %arg7[%c0_22, %c0_23] : memref<1x128xf32, #tpu.memory_space<vmem>>, vector<1x128xf32>
    %44 = vector.broadcast %43 : vector<1x128xf32> to vector<64x128xf32>
    %45 = arith.addf %42, %44 : vector<64x128xf32>
    %cst_24 = arith.constant 0.000000e+00 : f32
    %46 = vector.broadcast %cst_24 : f32 to vector<64x128xf32>
    %47 = arith.cmpf oge, %45, %46 : vector<64x128xf32>
    %cst_25 = arith.constant 0.00999999977 : f32
    %48 = vector.broadcast %cst_25 : f32 to vector<64x128xf32>
    %49 = arith.mulf %48, %45 : vector<64x128xf32>
    %50 = arith.select %47, %45, %49 : vector<64x128xi1>, vector<64x128xf32>
    %51 = vector.shape_cast %50 : vector<64x128xf32> to vector<4x16x128xf32>
    %c0_26 = arith.constant 0 : index
    %c0_27 = arith.constant 0 : index
    %c0_28 = arith.constant 0 : index
    %52 = vector.load %arg8[%c0_26, %c0_27, %c0_28] : memref<4x16x128xf32, #tpu.memory_space<vmem>>, vector<4x16x128xf32>
    tpu.vector_store %arg8[%c0_26, %c0_27, %c0_28], %51 {strides = array<i32>} : memref<4x16x128xf32, #tpu.memory_space<vmem>>, vector<4x16x128xf32>,
    return
  }
  func.func @transform_0(%arg0: i32) -> (i32, i32, i32) {
    %c0_i32 = arith.constant 0 : i32
    %c0_i32_0 = arith.constant 0 : i32
    %c0_i32_1 = arith.constant 0 : i32
    return %arg0, %c0_i32, %c0_i32_0 : i32, i32, i32
  }
  func.func @transform_1(%arg0: i32) -> (i32, i32, i32) {
    %c0_i32 = arith.constant 0 : i32
    %c0_i32_0 = arith.constant 0 : i32
    %c0_i32_1 = arith.constant 0 : i32
    return %arg0, %c0_i32, %c0_i32_0 : i32, i32, i32
  }
  func.func @transform_2(%arg0: i32) -> (i32, i32) {
    %c0_i32 = arith.constant 0 : i32
    %c0_i32_0 = arith.constant 0 : i32
    %c0_i32_1 = arith.constant 0 : i32
    return %c0_i32, %c0_i32_0 : i32, i32
  }
  func.func @transform_3(%arg0: i32) -> (i32, i32) {
    %c0_i32 = arith.constant 0 : i32
    %c0_i32_0 = arith.constant 0 : i32
    %c0_i32_1 = arith.constant 0 : i32
    return %c0_i32, %c0_i32_0 : i32, i32
  }
  func.func @transform_4(%arg0: i32) -> (i32, i32) {
    %c0_i32 = arith.constant 0 : i32
    %c0_i32_0 = arith.constant 0 : i32
    %c0_i32_1 = arith.constant 0 : i32
    return %c0_i32, %c0_i32_0 : i32, i32
  }
  func.func @transform_5(%arg0: i32) -> (i32, i32) {
    %c0_i32 = arith.constant 0 : i32
    %c0_i32_0 = arith.constant 0 : i32
    %c0_i32_1 = arith.constant 0 : i32
    return %c0_i32, %c0_i32_0 : i32, i32
  }
  func.func @transform_6(%arg0: i32) -> (i32, i32) {
    %c0_i32 = arith.constant 0 : i32
    %c0_i32_0 = arith.constant 0 : i32
    %c0_i32_1 = arith.constant 0 : i32
    return %c0_i32, %c0_i32_0 : i32, i32
  }
  func.func @transform_7(%arg0: i32) -> (i32, i32, i32) {
    %c0_i32 = arith.constant 0 : i32
    %c0_i32_0 = arith.constant 0 : i32
    %c0_i32_1 = arith.constant 0 : i32
    return %arg0, %c0_i32, %c0_i32_0 : i32, i32, i32
  }
}

</mosaic_0001>

<bundles_post_ra>
// kernel: tpu_custom_call.1
= control target key start
LH: loop header
LB: loop body
LE: loop exit
PB: predicated region body
PF: predicated region fallthrough
CT: control target
= control target key end

     0   :  { %s2980_s0 = inlined_call_operand.hbm [shape: f32[8,16,16], index: 0, kind: input, shape index: {}]   ;;  %s2981_s1 = inlined_call_operand.hbm [shape: f32[8,16,16], index: 1, kind: input, shape index: {}]   ;;  %s2982_s2 = inlined_call_operand.hbm [shape: f32[16,128], index: 2, kind: input, shape index: {}]   ;;  %s2983_s3 = inlined_call_operand.hbm [shape: f32[16,128], index: 3, kind: input, shape index: {}]   ;;  %s2984_s4 = inlined_call_operand.vmem [shape: f32[1,128], index: 4, kind: input, shape index: {}]   ;;  %s2985_s5 = inlined_call_operand.hbm [shape: f32[128,128], index: 5, kind: input, shape index: {}]   ;;  %s2986_s6 = inlined_call_operand.vmem [shape: f32[1,128], index: 6, kind: input, shape index: {}]   ;;  %s2987_s7 = inlined_call_operand.hbm [shape: f32[8,16,128], index: 7, kind: output, shape index: {}]  }
   0x1   :  { %2996 = sst [smem:[#allocation19_spill]] %s2980_s0 }
   0x2   :  { %2997 = sst [smem:[#allocation20_spill]] %s2982_s2 }
   0x3   :  { %2998 = sst [smem:[#allocation21_spill]] %s2983_s3 }
   0x4   :  { %2999 = sst [smem:[#allocation22_spill]] %s2985_s5 }
   0x5   :  { %12 = vsyncpa [#allocation3], 0 }
   0x6   :  { %14 = vsyncpa [#allocation3 + $0x1], 0 }
   0x7   :  { %15 = vsyncpa [#allocation6], 0 }
   0x8   :  { %17 = vsyncpa [#allocation6 + $0x1], 0 }
   0x9   :  { %18 = vsyncpa [#allocation9], 0 }
   0xa   :  { %19 = vsyncpa [#allocation4], 0 }
   0xb   :  { %21 = vsyncpa [#allocation4 + $0x1], 0  ;;  %s2539_s24 = smov 0   ;;  %s2541_s25 = smov 0  }
   0xc   :  { %s2543_s26 = smov 0   ;;  %s2545_s27 = smov 0  }
   0xd LB: > { %3000 = sst [smem:[#allocation17_spill]] %s2483_s26  ;;  %s2560_s28 = sadd.s32 4294967295, %s2487_s27   ;;  %s2487_s27 = sphi %s2545_s27, %s3026_s27   ;;  %s2483_s26 = sphi %s2543_s26, %s3023_s26   ;;  %s2479_s25 = sphi %s2541_s25, %s3025_s25   ;;  %s2475_s24 = sphi %s2539_s24, %s3024_s24  }
   0xe   : > { %s1867_s29 = sadd.s32 4294967294, %s2487_s27   ;;  %p47_p0 = scmp.ne.s32.totalorder %s2479_s25, %s2475_s24 }
   0xf   : > { %p2988_p1 = scmp.eq.s32.totalorder %s2560_s28, 0  ;;  %p202_p2 = scmp.eq.s32.totalorder %s2560_s28, 1 }
  0x10   : > { %p208_p3 = scmp.eq.s32.totalorder %s1867_s29, 1  ;;  %p1868_p5 = scmp.ge.s32.totalorder %s2487_s27, 1 }
  0x11   : > { %p2569_p4 = por %p2988_p1, %p47_p0  ;;  %p215_p7 = scmp.lt.s32.totalorder %s2487_s27, 3 }
  0x12   : > { %p2574_p6 = por %p208_p3, %p47_p0  ;;  %s2489_s10 = smov [#allocation7]  }
  0x13   : > { %s3001_s30 = scalar_select %p2569_p4, 1, 0 }
  0x14   : > { %s3002_s8 = scalar_select %p2574_p6, 1, 0 }
  0x15   : > { %p2579_p8 = pnand %p1868_p5, %p215_p7  ;;  %s227_s11 = sshll.u32 %s2489_s10, 4  ;;  %s228_s11 = int_to_ptr.vmem [resolvable:$true] %s227_s11 }
  0x16   : > { %s2490_s13 = smov [#allocation8]   ;;  %s2491_s15 = smov [#allocation10]  }
  0x17   : > { %p2192_p9 = pneg %p2579_p8  ;;  %s240_s14 = sshll.u32 %s2490_s13, 4  ;;  %s241_s14 = int_to_ptr.vmem [resolvable:$true] %s240_s14 }
  0x18   : > { %s256_s16 = sshll.u32 %s2491_s15, 4  ;;  %s2288_s17 = scalar_lea.vmem %s228_s11, 256  ;;  %s257_s16 = int_to_ptr.vmem [resolvable:$true] %s256_s16 }
  0x19   : > { %p2588_p11 = pnand %p2192_p9, %p2988_p1  ;;  %p2289_p13 = scmp.ne.s32.totalorder %s228_s11, %s2288_s17 }
  0x1a   : > { %p2296_p5 = scmp.lt.s32.totalorder %s228_s11, %s228_s11  ;;  %p2297_p7 = scmp.lt.s32.totalorder %s2288_s17, %s2288_s17 }
  0x1b   : > { %p2279_p12 = pneg %p2588_p11 }
  0x1c   : > { %p2298_p9 = por %p2297_p7, %p2296_p5 }
  0x1d   : > { %p2291_p0 = pnand %p2289_p13, %p2279_p12 }
  0x1f   : > { %p2292_p3 = pneg %p2291_p0 }
  0x21   : > { %p2299_p10 = pnand %p2298_p9, %p2292_p3 }
  0x23   : > { %2302 = shalt.err (!%p2299_p10)
}
  0x24   : > { %s2989_s18 = smov 128   ;;  %s2991_s19 = smov 8  }
  0x25   : > { %s3005_s2 = sld [smem:[#allocation20_spill]]  ;;  %s2314_s22 = scalar_lea.vmem %s241_s14, 256 }
  0x26   : > { %p2315_p13 = scmp.ne.s32.totalorder %s241_s14, %s2314_s22  ;;  %p2322_p3 = scmp.lt.s32.totalorder %s241_s14, %s241_s14 }
  0x27   : > { %p2323_p10 = scmp.lt.s32.totalorder %s2314_s22, %s2314_s22 }
  0x28   : > { %p2317_p0 = pnand %p2315_p13, %p2279_p12 }
  0x29   : > { %p2324_p7 = por %p2323_p10, %p2322_p3 }
  0x2a   : > { %p2318_p5 = pneg %p2317_p0 }
  0x2b   : > { %2195 = dma.hbm_to_vmem [thread:$0]  (!%p2588_p11), %s3005_s2, 256, %s228_s11, [#allocation6], %s2989_s18, %s2989_s18, %s2991_s19  }
  0x2c   : > { %p2325_p9 = pnand %p2324_p7, %p2318_p5 }
  0x2e   : > { %2328 = shalt.err (!%p2325_p9)
}
  0x2f   : > { %s3006_s3 = sld [smem:[#allocation21_spill]]  ;;  %s2340_s10 = scalar_lea.vmem %s257_s16, 2048 }
  0x30   : > { %p2341_p1 = scmp.ne.s32.totalorder %s257_s16, %s2340_s10  ;;  %p2348_p3 = scmp.lt.s32.totalorder %s257_s16, %s257_s16 }
  0x31   : > { %p2349_p5 = scmp.lt.s32.totalorder %s2340_s10, %s2340_s10 }
  0x32   : > { %p2343_p13 = pnand %p2341_p1, %p2279_p12 }
  0x33   : > { %p2350_p10 = por %p2349_p5, %p2348_p3 }
  0x34   : > { %p2344_p0 = pneg %p2343_p13 }
  0x35   : > { %2198 = dma.hbm_to_vmem [thread:$0]  (!%p2588_p11), %s3006_s3, 256, %s241_s14, [#allocation9], %s2989_s18, %s2989_s18, %s2991_s19  }
  0x36   : > { %p2351_p7 = pnand %p2350_p10, %p2344_p0 }
  0x38   : > { %2354 = shalt.err (!%p2351_p7)
}
  0x39   : > { %s3007_s5 = sld [smem:[#allocation22_spill]]  ;;  %s2628_s14 = sadd.s32 1, %s2487_s27  }
  0x3a   : > { %s31_s12 = ssub.s32 %s2487_s27, %s2628_s14  ;;  %s34_s15 = sadd.s32 1, %s2483_s26 }
  0x3b   : > { %p32_p1 = scmp.eq.s32.totalorder %s31_s12, 0  ;;  %p41_p12 = scmp.ne.s32.totalorder %s2483_s26, %s2479_s25 }
  0x3c   : > { %p42_p9 = scmp.eq.s32.totalorder %s2487_s27, 0  ;;  %p2216_p13 = scmp.lt.s32.totalorder %s2487_s27, 2 }
  0x3d   : > { %s2638_s17 = scalar_select %p32_p1, %s2483_s26, %s34_s15  }
  0x3e   : > { %p43_p0 = por %p42_p9, %p41_p12  ;;  %p2642_p3 = por %p202_p2, %p41_p12 }
  0x3f   : > { %2201 = dma.hbm_to_vmem [thread:$0]  (!%p2588_p11), %s3007_s5, 2048, %s257_s16, [#allocation9], %s2989_s18, %s2989_s18, %s2991_s19  }
  0x40   : > { %3008 = sst [smem:[#allocation18_spill]] %s2638_s17  ;;  %s273_s21 = sand.u32 1, %s2483_s26  }
  0x41   : > { %s3009_s20 = scalar_select %p2642_p3, 1, 0 }
  0x42   : > { %s1929_s22 = sshll.u32 %s2487_s27, 10  ;;  %s2648_s16 = sshll.u32 %s273_s21, 6 }
  0x43   : > { %s3010_s0 = sld [smem:[#allocation19_spill]]  ;;  %s277_s11 = scalar_lea.vmem [#allocation2], %s2648_s16 }
  0x44   : > { %s285_s13 = sshll.u32 %s277_s11, 4  ;;  %p2656_p11 = pnand %p2216_p13, %p43_p0  ;;  %s2660_s13 = int_to_ptr.vmem [resolvable:$true] %s285_s13 }
  0x45   : > { %s2665_s23 = scalar_lea.hbm %s2981_s1, %s1929_s22  ;;  %s2667_s29 = scalar_lea.sflag [#allocation3], %s273_s21 }
  0x46   : > { %p2357_p5 = pneg %p2656_p11 }
  0x49   : > { %s2653_s10 = scalar_lea.hbm %s3010_s0, %s1929_s22  ;;  %s2360_s3 = scalar_lea.hbm %s3010_s0, 2048 }
  0x4a   : > { %s2355_s19 = scalar_lea.hbm %s2653_s10, 1024  ;;  %p2361_p1 = scmp.lt.s32.totalorder %s2653_s10, %s3010_s0 }
  0x4b   : > { %p2356_p2 = scmp.ne.s32.totalorder %s2653_s10, %s2355_s19  ;;  %p2362_p12 = scmp.lt.s32.totalorder %s2360_s3, %s2355_s19 }
  0x4d   : > { %p2358_p10 = pnand %p2357_p5, %p2356_p2  ;;  %p2363_p9 = por %p2362_p12, %p2361_p1 }
  0x4f   : > { %p2359_p7 = pneg %p2358_p10 }
  0x51   : > { %p2364_p13 = pnand %p2363_p9, %p2359_p7 }
  0x53   : > { %2367 = shalt.err (!%p2364_p13)
}
  0x54   : > { %s2368_s18 = scalar_lea.vmem %s2660_s13, 1024  ;;  %s2494_s2 = smov [#allocation2]  }
  0x55   : > { %p2369_p0 = scmp.ne.s32.totalorder %s2660_s13, %s2368_s18  ;;  %s2373_s21 = sshll.u32 %s2494_s2, 4  ;;  %s2374_s21 = int_to_ptr.vmem [resolvable:$false] %s2373_s21 }
  0x56   : > { %s2375_s22 = scalar_lea.vmem %s2374_s21, 2048  ;;  %p2376_p6 = scmp.lt.s32.totalorder %s2660_s13, %s2374_s21 }
  0x57   : > { %p2371_p2 = pnand %p2369_p0, %p2357_p5  ;;  %p2377_p3 = scmp.lt.s32.totalorder %s2375_s22, %s2368_s18 }
  0x59   : > { %p2372_p10 = pneg %p2371_p2  ;;  %p2378_p4 = por %p2377_p3, %p2376_p6 }
  0x5b   : > { %p2379_p1 = pnand %p2378_p4, %p2372_p10 }
  0x5d   : > { %2382 = shalt.err (!%p2379_p1)
}
  0x5e   : > { %s3012_s3 = smov 8   ;;  %s3013_s5 = smov 128  }
  0x5f   : > { %2205 = dma.hbm_to_vmem [thread:$0]  (!%p2656_p11), %s2653_s10, 1024, %s2660_s13, %s2667_s29, %s3013_s5, %s3013_s5, %s3012_s3  }
  0x60   : > { %s299_s19 = scalar_lea.vmem [#allocation5], %s2648_s16  ;;  %s295_s15 = sand.u32 1, %s2487_s27  }
  0x61   : > { %s307_s17 = sshll.u32 %s299_s19, 4  ;;  %s296_s11 = scalar_lea.sflag [#allocation6], %s295_s15  ;;  %s2699_s17 = int_to_ptr.vmem [resolvable:$true] %s307_s17 }
  0x62   : > { %s2383_s18 = scalar_lea.hbm %s2665_s23, 1024  ;;  %s2388_s22 = scalar_lea.hbm %s2981_s1, 2048 }
  0x63   : > { %p2384_p4 = scmp.ne.s32.totalorder %s2665_s23, %s2383_s18  ;;  %p2389_p7 = scmp.lt.s32.totalorder %s2665_s23, %s2981_s1 }
  0x64   : > { %p2390_p12 = scmp.lt.s32.totalorder %s2388_s22, %s2383_s18 }
  0x65   : > { %p2386_p6 = pnand %p2384_p4, %p2357_p5 }
  0x66   : > { %p2391_p9 = por %p2390_p12, %p2389_p7 }
  0x67   : > { %p2387_p3 = pneg %p2386_p6 }
  0x69   : > { %p2392_p13 = pnand %p2391_p9, %p2387_p3 }
  0x6b   : > { %2395 = shalt.err (!%p2392_p13)
}
  0x6c   : > { %s2396_s16 = scalar_lea.vmem %s2699_s17, 1024  ;;  %s2495_s10 = smov [#allocation5]  }
  0x6d   : > { %p2397_p0 = scmp.ne.s32.totalorder %s2699_s17, %s2396_s16  ;;  %s2401_s13 = sshll.u32 %s2495_s10, 4  ;;  %s2402_s13 = int_to_ptr.vmem [resolvable:$false] %s2401_s13 }
  0x6e   : > { %s2403_s29 = scalar_lea.vmem %s2402_s13, 2048  ;;  %p2404_p1 = scmp.lt.s32.totalorder %s2699_s17, %s2402_s13 }
  0x6f   : > { %p2399_p2 = pnand %p2397_p0, %p2357_p5  ;;  %p2405_p4 = scmp.lt.s32.totalorder %s2403_s29, %s2396_s16 }
  0x71   : > { %p2400_p10 = pneg %p2399_p2  ;;  %p2406_p6 = por %p2405_p4, %p2404_p1 }
  0x73   : > { %p2407_p7 = pnand %p2406_p6, %p2400_p10 }
  0x75   : > { %2410 = shalt.err (!%p2407_p7)
}
  0x76   : > { %2208 = dma.hbm_to_vmem [thread:$0]  (!%p2656_p11), %s2665_s23, 1024, %s2699_s17, %s296_s11, %s3013_s5, %s3013_s5, %s3012_s3  }
  0x77   : > { %319 = sbr.rel (%p2579_p8) target bundleno = 1053 (0x41d), region = 48  ;;  %s2729_s0 = sand.u32 (!%p2579_p8), 1, %s2479_s25  }
  0x78   : > { %s2732_s26 = sshll.u32 (!%p2579_p8), %s2729_s0, 6  ;;  %s322_s19 = scalar_lea.sflag (!%p2579_p8), [#allocation3], %s2729_s0 }
  0x79   : > { %s2736_s12 = scalar_lea.vmem (!%p2579_p8), [#allocation2], %s2732_s26  ;;  %p3014_p5 = scmp.ne.s32.totalorder (!%p2579_p8), %s3001_s30, 0 }
  0x7c   : > { %2454 = dma.done.wait (%p3014_p5), %s322_s19, 1024  }
  0x7d   : > { %2456 = vsyncadd (%p3014_p5), %s322_s19, 4294966272  ;;  %s330_s9 = sand.u32 1, %s2560_s28   ;;  %s2744_s3 = scalar_lea.vmem [#allocation5], %s2732_s26 }
  0x7e   : > { %s331_s23 = scalar_lea.sflag [#allocation6], %s330_s9 }
  0x7f   : > { %2458 = dma.done.wait (%p3014_p5), %s331_s23, 1024  }
  0x80   : > { %2460 = vsyncadd (%p3014_p5), %s331_s23, 4294966272  ;;  %p3015_p8 = scmp.eq.s32.totalorder %s2560_s28, 0 }
  0x82   : > { %2462 = dma.done.wait (%p3015_p8), [#allocation6], 256   ;;  %p3016_p11 = pmov %p3015_p8 }
  0x83   : > { %p3017_p3 = pmov %p3015_p8 }
  0x84   : > { %2464 = vsyncadd (%p3016_p11), [#allocation6], 4294967040 }
  0x85   : > { %2466 = dma.done.wait (%p3017_p3), [#allocation9], 2304   ;;  %p3018_p12 = pmov %p3017_p3 }
  0x86   : > { %v401_v0 = vlaneseq  ;;  %v385_v4 = vld [vmem:[%s2736_s12] sm:$0xff]  ;;  %vm428_vm2 = vcmask 130048   ;;  %v387_v5 = vld [vmem:[%s2736_s12 + $0x10] sm:$0xff]  ;;  %v386_v6 = vld [vmem:[%s2736_s12 + $0x8] sm:$0xff]  ;;  %s2920_s11 = scalar_lea.vmem [#allocation11], %s2732_s26  ;;  %s1933_s2 = sshll.u32 %s2560_s28, 10 }
  0x87   : > { %2468 = vsyncadd (%p3018_p12), [#allocation9], 4294964992  ;;  %v388_v10 = vld [vmem:[%s2736_s12 + $0x18] sm:$0xff]  ;;  %v389_v11 = vld [vmem:[%s2736_s12 + $0x20] sm:$0xff]  ;;  %s1743_s18 = sshll.u32 %s2920_s11, 4  ;;  %s2935_s16 = scalar_lea.hbm %s2987_s7, %s1933_s2  ;;  %s2929_s18 = int_to_ptr.vmem [resolvable:$true] %s1743_s18 }
  0x88   : > { %v402_v1 = vshrl.u32 %v401_v0, 7  ;;  %v405_v2 = vand.u32 127, %v401_v0  ;;  %v390_v12 = vld [vmem:[%s2736_s12 + $0x28] sm:$0xff]  ;;  %v391_v22 = vld [vmem:[%s2736_s12 + $0x30] sm:$0xff]  ;;  %v392_v23 = vld [vmem:[%s2736_s12 + $0x38] sm:$0xff]  ;;  %s1729_s28 = scalar_lea.sflag [#allocation4], %s2729_s0 }
  0x89   : > { %v2807_v36 = vld [vmem:[%s2744_s3 + $0x8] sm:$0xff]  ;;  %v2812_v37 = vld [vmem:[%s2744_s3] sm:$0xff]  ;;  %v2815_v38 = vld [vmem:[%s2744_s3 + $0x18] sm:$0xff]  ;;  %s2411_s10 = scalar_lea.vmem %s2929_s18, 1024  ;;  %p3019_p13 = scmp.ne.s32.totalorder %s3009_s20, 0 }
  0x8a   : > { %v403_v3 = vadd.s32 8, %v402_v1  ;;  %vm406_vm0 = vcmp.eq.s32.totalorder %v402_v1, %v405_v2  ;;  %2010 = vmatprep.subr.mxu0 %v2807_v36  ;;  %2017 = vmatprep.subr.mxu1 %v2815_v38  ;;  %v2820_v39 = vld [vmem:[%s2744_s3 + $0x10] sm:$0xff]  ;;  %v2827_v40 = vld [vmem:[%s2744_s3 + $0x28] sm:$0xff]  ;;  %v2831_v41 = vld [vmem:[%s2744_s3 + $0x38] sm:$0xff]  ;;  %p2412_p9 = scmp.ne.s32.totalorder %s2929_s18, %s2411_s10  ;;  %s2496_s13 = smov [#allocation11]  }
  0x8b   : > { %v2762_v7 = vsel %vm406_vm0, 0.0, %v385_v4  ;;  %v2765_v8 = vsel %vm406_vm0, 0.0, %v387_v5  ;;  %v2780_v17 = vsel %vm406_vm0, 0.0, %v389_v11  ;;  %v2795_v28 = vsel %vm406_vm0, 0.0, %v391_v22  ;;  %2011 = vmatpush3.msra.mxu0 %v2807_v36  ;;  %2018 = vmatpush3.msra.mxu1 %v2815_v38  ;;  %v1267_v22 = vld [vmem:[#allocation7] sm:$0xff]  ;;  %s2415_s29 = sshll.u32 %s2496_s13, 4  ;;  %s2416_s29 = int_to_ptr.vmem [resolvable:$false] %s2415_s29 }
  0x8c   : > { %vm407_vm1 = vcmp.eq.s32.totalorder %v403_v3, %v405_v2  ;;  %v420_v13 = vand.u32 2147483647, %v2762_v7  ;;  %v422_v14 = vand.u32 2147483647, %v2765_v8  ;;  %v424_v26 = vand.u32 2147483647, %v2780_v17  ;;  %2012 = vmatprep.subr.mxu0 %v2812_v37  ;;  %2019 = vmatprep.subr.mxu1 %v2820_v39  ;;  %p2413_p0 = pnand %p2412_p9, %p3019_p13  ;;  %p2418_p10 = scmp.lt.s32.totalorder %s2929_s18, %s2416_s29 }
  0x8d   : > { %v2768_v9 = vsel %vm407_vm1, 0.0, %v386_v6  ;;  %v2777_v16 = vsel %vm407_vm1, 0.0, %v388_v10  ;;  %v2783_v18 = vsel %vm407_vm1, 0.0, %v390_v12  ;;  %v2798_v29 = vsel %vm407_vm1, 0.0, %v392_v23  ;;  %2013 = vmatpush3.msra.mxu0 %v2812_v37  ;;  %2020 = vmatpush3.msra.mxu1 %v2820_v39  ;;  %v2842_v2 = vld [vmem:[%s2744_s3 + $0x20] sm:$0xff]  ;;  %v2845_v3 = vld [vmem:[%s2744_s3 + $0x30] sm:$0xff] }
  0x8e   : > { %v421_v15 = vand.u32 2147483647, %v2768_v9  ;;  %v429_v19 = vsel %vm428_vm2, %v420_v13, 0.0  ;;  %v435_v20 = vsel %vm428_vm2, %v422_v14, 0.0  ;;  %v423_v21 = vand.u32 2147483647, %v2777_v16  ;;  %2024 = vmatprep.subr.mxu0 %v2827_v40  ;;  %2031 = vmatprep.subr.mxu1 %v2831_v41  ;;  %p2414_p2 = pneg %p2413_p0 }
  0x8f   : > { %430 = vadd.xlane.f32.xlu0 %v429_v19  ;;  %436 = vadd.xlane.f32.xlu1 %v435_v20  ;;  %v425_v27 = vand.u32 2147483647, %v2783_v18  ;;  %v441_v30 = vsel %vm428_vm2, %v424_v26, 0.0  ;;  %v426_v32 = vand.u32 2147483647, %v2795_v28  ;;  %v1269_v23 = vld [vmem:[#allocation8] sm:$0xff] }
  0x90   : > { %v432_v24 = vsel %vm428_vm2, %v421_v15, 0.0  ;;  %v438_v25 = vsel %vm428_vm2, %v423_v21, 0.0  ;;  %v427_v33 = vand.u32 2147483647, %v2798_v29  ;;  %s2417_s26 = scalar_lea.vmem %s2416_s29, 2048 }
  0x91   : > { %v444_v31 = vsel %vm428_vm2, %v425_v27, 0.0  ;;  %v447_v34 = vsel %vm428_vm2, %v426_v32, 0.0  ;;  %v1583_v32 = vld [vmem:[#allocation10 + $0x78] sm:$0xff]  ;;  %p2419_p1 = scmp.lt.s32.totalorder %s2417_s26, %s2411_s10 }
  0x92   : > { %v450_v35 = vsel %vm428_vm2, %v427_v33, 0.0  ;;  %v1582_v33 = vld [vmem:[#allocation10 + $0x70] sm:$0xff] }
  0x93   : > { %433 = vadd.xlane.f32.xlu0 %v432_v24  ;;  %439 = vadd.xlane.f32.xlu1 %v438_v25  ;;  %p2420_p4 = por %p2419_p1, %p2418_p10 }
  0x95   : > { %p2421_p6 = pnand %p2420_p4, %p2414_p2 }
  0x97   : > { %442 = vadd.xlane.f32.xlu0 %v441_v30  ;;  %445 = vadd.xlane.f32.xlu1 %v444_v31 }
  0x9b   : > { %448 = vadd.xlane.f32.xlu0 %v447_v34  ;;  %451 = vadd.xlane.f32.xlu1 %v450_v35  ;;  %v1581_v34 = vld [vmem:[#allocation10 + $0x68] sm:$0xff]  ;;  %v1580_v35 = vld [vmem:[#allocation10 + $0x60] sm:$0xff] }
 0x118   : > { %v431_v42 = vpop.xlane.xlu0 %430  ;;  %v437_v43 = vpop.xlane.xlu1 %436 }
 0x119   : > { %v453_v44 = vmax.f32 %v431_v42, 1e-12  ;;  %v455_v45 = vmax.f32 %v437_v43, 1e-12  ;;  %v1573_v42 = vld [vmem:[#allocation10 + $0x28] sm:$0xff] }
 0x11b   : > { %2261 = vrcp.f32 %v453_v44 }
 0x11c   : > { %2263 = vrcp.f32 %v455_v45  ;;  %v434_v46 = vpop.xlane.xlu0 %433  ;;  %v440_v47 = vpop.xlane.xlu1 %439 }
 0x11d   : > { %v454_v48 = vmax.f32 %v434_v46, 1e-12  ;;  %v456_v49 = vmax.f32 %v440_v47, 1e-12 }
 0x11f   : > { %2265 = vrcp.f32 %v454_v48 }
 0x120   : > { %2267 = vrcp.f32 %v456_v49  ;;  %v443_v50 = vpop.xlane.xlu0 %442  ;;  %v446_v51 = vpop.xlane.xlu1 %445 }
 0x121   : > { %v457_v52 = vmax.f32 %v443_v50, 1e-12  ;;  %v458_v53 = vmax.f32 %v446_v51, 1e-12  ;;  %v1572_v51 = vld [vmem:[#allocation10 + $0x20] sm:$0xff] }
 0x123   : > { %2269 = vrcp.f32 %v457_v52  ;;  %v1571_v52 = vld [vmem:[#allocation10 + $0x18] sm:$0xff] }
 0x124   : > { %2271 = vrcp.f32 %v458_v53  ;;  %v449_v54 = vpop.xlane.xlu0 %448  ;;  %v452_v55 = vpop.xlane.xlu1 %451  ;;  %v1570_v53 = vld [vmem:[#allocation10 + $0x10] sm:$0xff] }
 0x125   : > { %v459_v56 = vmax.f32 %v449_v54, 1e-12  ;;  %v460_v57 = vmax.f32 %v452_v55, 1e-12  ;;  %v1569_v54 = vld [vmem:[#allocation10 + $0x8] sm:$0xff]  ;;  %v1568_v55 = vld [vmem:[#allocation10] sm:$0xff] }
 0x127   : > { %2273 = vrcp.f32 %v459_v56 }
 0x128   : > { %v2262_v58 = vpop.eup %2261  ;;  %2275 = vrcp.f32 %v460_v57 }
 0x129   : > { %v2264_v59 = vpop.eup %2263  ;;  %v462_v60 = vmul.f32 %v2262_v58, %v2762_v7 }
 0x12a   : > { %v466_v61 = vmul.f32 %v2264_v59, %v2765_v8 }
 0x12b   : > { %801 = vxpose.xlu0.b32.start [1/2] (short) (narrow) %v462_v60, 16  ;;  %2014 = vmatprep.mubr.msk.f32.mxu0 %vm428_vm2, %v462_v60 }
 0x12c   : > { %v2266_v62 = vpop.eup %2265  ;;  %914 = vxpose.xlu1.b32.start [1/2] (short) (narrow) %v466_v61, 16  ;;  %2021 = vmatprep.mubr.msk.f32.mxu1 %vm428_vm2, %v466_v61  ;;  %v1920_v61 = vld [vmem:[%s2984_s4] ss:$0 sm:$0xff] }
 0x12d   : > { %v2268_v63 = vpop.eup %2267  ;;  %v464_v0 = vmul.f32 %v2266_v62, %v2768_v9 }
 0x12e   : > { %v468_v1 = vmul.f32 %v2268_v63, %v2777_v16  ;;  %v1268_v16 = vld [vmem:[#allocation7 + $0x8] sm:$0xff] }
 0x12f   : > { %802 = vxpose.xlu0.b32.end [2/2] (short) (narrow) %v464_v0, 16  ;;  %2015 = vmatmul.mubr.msk.f32.vlgmr.msra.gmra.mxu0 %vm428_vm2, %v464_v0 }
 0x130   : > { %v2270_v4 = vpop.eup %2269  ;;  %915 = vxpose.xlu1.b32.end [2/2] (short) (narrow) %v468_v1, 16  ;;  %2022 = vmatmul.mubr.msk.f32.vlgmr.msra.gmra.mxu1 %vm428_vm2, %v468_v1 }
 0x131   : > { %v2272_v5 = vpop.eup %2271  ;;  %2025 = vmatpush3.msra.mxu0 %v2827_v40  ;;  %v470_v6 = vmul.f32 %v2270_v4, %v2780_v17  ;;  %2032 = vmatpush3.msra.mxu1 %v2831_v41  ;;  %v1270_v17 = vld [vmem:[#allocation8 + $0x8] sm:$0xff] }
 0x132   : > { %2026 = vmatprep.subr.mxu0 %v2842_v2  ;;  %v472_v7 = vmul.f32 %v2272_v5, %v2783_v18  ;;  %2033 = vmatprep.subr.mxu1 %v2845_v3 }
 0x133   : > { %1027 = vxpose.xlu0.b32.start [1/2] (short) (narrow) %v470_v6, 16  ;;  %2028 = vmatprep.mubr.msk.f32.mxu0 %vm428_vm2, %v470_v6 }
 0x134   : > { %v2274_v8 = vpop.eup %2273  ;;  %2027 = vmatpush3.msra.mxu0 %v2842_v2  ;;  %2034 = vmatpush3.msra.mxu1 %v2845_v3 }
 0x135   : > { %v2276_v9 = vpop.eup %2275  ;;  %2029 = vmatmul.mubr.msk.f32.vlgmr.msra.gmra.mxu0 %vm428_vm2, %v472_v7  ;;  %v474_v10 = vmul.f32 %v2274_v8, %v2795_v28  ;;  %2038 = vmatprep.subr.mxu0 %v2807_v36 }
 0x136   : > { %v476_v11 = vmul.f32 %v2276_v9, %v2798_v29  ;;  %2039 = vmatpush3.msra.mxu0 %v2807_v36  ;;  %2045 = vmatprep.subr.mxu1 %v2815_v38 }
 0x137   : > { %1028 = vxpose.xlu0.b32.end [2/2] (short) (narrow) %v472_v7, 16  ;;  %1140 = vxpose.xlu1.b32.start [1/2] (short) (narrow) %v474_v10, 16 }
 0x138   : > { %2035 = vmatprep.mubr.msk.f32.mxu1 %vm428_vm2, %v474_v10  ;;  %2040 = vmatprep.subr.mxu0 %v2812_v37 }
 0x139   : > { %2036 = vmatmul.mubr.msk.f32.vlgmr.msra.gmra.mxu1 %vm428_vm2, %v476_v11  ;;  %2041 = vmatpush3.msra.mxu0 %v2812_v37 }
 0x13a   : > { %2046 = vmatpush3.msra.mxu1 %v2815_v38  ;;  %2052 = vmatprep.subr.mxu0 %v2827_v40 }
 0x13b   : > { %1141 = vxpose.xlu1.b32.end [2/2] (short) (narrow) %v476_v11, 16  ;;  %2047 = vmatprep.subr.mxu1 %v2820_v39 }
 0x13c   : > { %2048 = vmatpush3.msra.mxu1 %v2820_v39 }
 0x13d   : > { %2059 = vmatprep.subr.mxu1 %v2831_v41 }
 0x1a7   : > { %v817_v12 = vpop.trf.xlu0 }
 0x1a8   : > { %2042 = vmatprep.mubr.msk.f32.mxu0 %vm428_vm2, %v817_v12  ;;  %v930_v13 = vpop.trf.xlu1 }
 0x1a9   : > { %2049 = vmatprep.mubr.msk.f32.mxu1 %vm428_vm2, %v930_v13 }
 0x1ab   : > { %v818_v14 = vpop.trf.xlu0 }
 0x1ac   : > { %2043 = vmatmul.mubr.msk.f32.vlgmr.msra.gmra.mxu0 %vm428_vm2, %v818_v14  ;;  %v931_v15 = vpop.trf.xlu1 }
 0x1ad   : > { %2050 = vmatmul.mubr.msk.f32.vlgmr.msra.gmra.mxu1 %vm428_vm2, %v931_v15  ;;  %2053 = vmatpush3.msra.mxu0 %v2827_v40 }
 0x1ae   : > { %2054 = vmatprep.subr.mxu0 %v2842_v2  ;;  %2060 = vmatpush3.msra.mxu1 %v2831_v41 }
 0x1af   : > { %v1043_v18 = vpop.trf.xlu0  ;;  %2055 = vmatpush3.msra.mxu0 %v2842_v2  ;;  %2061 = vmatprep.subr.mxu1 %v2845_v3 }
 0x1b0   : > { %2056 = vmatprep.mubr.msk.f32.mxu0 %vm428_vm2, %v1043_v18  ;;  %2062 = vmatpush3.msra.mxu1 %v2845_v3 }
 0x1b1   : > { %2082 = vmatprep.subr.mxu1 %v1268_v16  ;;  %2066 = vmatprep.subr.mxu0 %v1270_v17 }
 0x1b3   : > { %v1156_v19 = vpop.trf.xlu1  ;;  %v1044_v20 = vpop.trf.xlu0 }
 0x1b4   : > { %2057 = vmatmul.mubr.msk.f32.vlgmr.msra.gmra.mxu0 %vm428_vm2, %v1044_v20  ;;  %2063 = vmatprep.mubr.msk.f32.mxu1 %vm428_vm2, %v1156_v19 }
 0x1b5   : > { %2067 = vmatpush3.msra.mxu0 %v1270_v17 }
 0x1b6   : > { %2068 = vmatprep.subr.mxu0 %v1269_v23 }
 0x1b7   : > { %v1157_v21 = vpop.trf.xlu1  ;;  %2069 = vmatpush3.msra.mxu0 %v1269_v23 }
 0x1b8   : > { %2064 = vmatmul.mubr.msk.f32.vlgmr.msra.gmra.mxu1 %vm428_vm2, %v1157_v21  ;;  %2098 = vmatprep.subr.mxu0 %v1583_v32 }
 0x1b9   : > { %2083 = vmatpush3.msra.mxu1 %v1268_v16  ;;  %2086 = vmatprep.mubr.msk.f32.mxu1 %vm428_vm2, %v2812_v37  ;;  %v1578_v37 = vld [vmem:[#allocation10 + $0x50] sm:$0xff] }
 0x1ba   : > { %2084 = vmatprep.subr.mxu1 %v1267_v22 }
 0x1bb   : > { %2085 = vmatpush3.msra.mxu1 %v1267_v22 }
 0x1bc   : > { %2087 = vmatmul.mubr.msk.f32.vlgmr.msra.gmra.mxu1 %vm428_vm2, %v2807_v36  ;;  %2142 = vmatprep.subr.mxu1 %v1583_v32  ;;  %v1579_v36 = vld [vmem:[#allocation10 + $0x58] sm:$0xff] }
 0x1bd   : > { %2089 = vmatprep.mubr.msk.f32.mxu1 %vm428_vm2, %v2820_v39  ;;  %2158 = vmatpush3.msra.mxu1 %v1583_v32  ;;  %v1576_v39 = vld [vmem:[#allocation10 + $0x40] sm:$0xff] }
 0x1be   : > { %2143 = vmatprep.subr.mxu1 %v1582_v33 }
 0x1bf   : > { %2159 = vmatpush3.msra.mxu1 %v1582_v33 }
 0x1c0   : > { %2090 = vmatmul.mubr.msk.f32.gmra.mxu1 %vm428_vm2, %v2815_v38  ;;  %2144 = vmatprep.subr.mxu1 %v1581_v34  ;;  %v1577_v38 = vld [vmem:[#allocation10 + $0x48] sm:$0xff] }
 0x1c1   : > { %2092 = vmatprep.mubr.msk.f32.mxu1 %vm428_vm2, %v2842_v2  ;;  %2160 = vmatpush3.msra.mxu1 %v1581_v34 }
 0x1c2   : > { %2145 = vmatprep.subr.mxu1 %v1580_v35 }
 0x1c3   : > { %2161 = vmatpush3.msra.mxu1 %v1580_v35 }
 0x1c4   : > { %2093 = vmatmul.mubr.msk.f32.gmra.mxu1 %vm428_vm2, %v2827_v40  ;;  %2146 = vmatprep.subr.mxu1 %v1579_v36  ;;  %v1575_v40 = vld [vmem:[#allocation10 + $0x38] sm:$0xff] }
 0x1c5   : > { %2095 = vmatprep.mubr.msk.f32.mxu1 %vm428_vm2, %v2845_v3  ;;  %2162 = vmatpush3.msra.mxu1 %v1579_v36 }
 0x1c6   : > { %2147 = vmatprep.subr.mxu1 %v1578_v37 }
 0x1c7   : > { %2163 = vmatpush3.msra.mxu1 %v1578_v37 }
 0x1c8   : > { %2096 = vmatmul.mubr.msk.f32.gmra.mxu1 %vm428_vm2, %v2831_v41  ;;  %2148 = vmatprep.subr.mxu1 %v1577_v38  ;;  %v1574_v41 = vld [vmem:[#allocation10 + $0x30] sm:$0xff] }
 0x1c9   : > { %2164 = vmatpush3.msra.mxu1 %v1577_v38 }
 0x1ca   : > { %2149 = vmatprep.subr.mxu1 %v1576_v39 }
 0x1cb   : > { %2165 = vmatpush3.msra.mxu1 %v1576_v39 }
 0x1cc   : > { %2150 = vmatprep.subr.mxu1 %v1575_v40 }
 0x1cd   : > { %2166 = vmatpush3.msra.mxu1 %v1575_v40 }
 0x1ce   : > { %2151 = vmatprep.subr.mxu1 %v1574_v41 }
 0x1cf   : > { %2167 = vmatpush3.msra.mxu1 %v1574_v41 }
 0x1d0   : > { %2152 = vmatprep.subr.mxu1 %v1573_v42 }
 0x1d1   : > { %2168 = vmatpush3.msra.mxu1 %v1573_v42 }
 0x1d2   : > { %2153 = vmatprep.subr.mxu1 %v1572_v51 }
 0x1d3   : > { %2169 = vmatpush3.msra.mxu1 %v1572_v51 }
 0x1d4   : > { %2154 = vmatprep.subr.mxu1 %v1571_v52 }
 0x1d5   : > { %2170 = vmatpush3.msra.mxu1 %v1571_v52 }
 0x1d6   : > { %2155 = vmatprep.subr.mxu1 %v1570_v53 }
 0x1d7   : > { %2171 = vmatpush3.msra.mxu1 %v1570_v53 }
 0x1d8   : > { %2156 = vmatprep.subr.mxu1 %v1569_v54 }
 0x1d9   : > { %2172 = vmatpush3.msra.mxu1 %v1569_v54 }
 0x1da   : > { %2157 = vmatprep.subr.mxu1 %v1568_v55 }
 0x1db   : > { %2173 = vmatpush3.msra.mxu1 %v1568_v55 }
 0x1ef   : > { %v2016_v24 = vpop.f32.mrf.mxu0 }
 0x1f0   : > { %v2023_v25 = vpop.f32.mrf.mxu1 }
 0x1f1   : > { %v549_v26 = vpop.f32.mrf.mxu0 }
 0x1f2   : > { %v630_v27 = vpop.f32.mrf.mxu1 }
 0x1f5   : > { %v2030_v28 = vpop.f32.mrf.mxu0 }
 0x1f7   : > { %v711_v29 = vpop.f32.mrf.mxu0 }
 0x1f9   : > { %v2900_v30 = vpop.f32.mrf.mxu1 }
 0x1fb   : > { %v792_v31 = vpop.f32.mrf.mxu1 }
 0x26c   : > { %v2044_v43 = vpop.f32.mrf.mxu0 }
 0x26d   : > { %v2051_v44 = vpop.f32.mrf.mxu1 }
 0x26e   : > { %v905_v45 = vpop.f32.mrf.mxu0 }
 0x26f   : > { %2070 = vmatprep.mubr.msk.f32.mxu0 %vm428_vm2, %v905_v45  ;;  %v1018_v46 = vpop.f32.mrf.mxu1 }
 0x270   : > { %2071 = vmatmul.mubr.msk.f32.vlgmr.msra.gmra.mxu0 %vm428_vm2, %v2016_v24 }
 0x271   : > { %2073 = vmatprep.mubr.msk.f32.mxu0 %vm428_vm2, %v1018_v46  ;;  %2099 = vmatpush3.msra.mxu0 %v1583_v32 }
 0x272   : > { %2100 = vmatprep.subr.mxu0 %v1582_v33 }
 0x273   : > { %2101 = vmatpush3.msra.mxu0 %v1582_v33 }
 0x274   : > { %v2058_v47 = vpop.f32.mrf.mxu0  ;;  %2074 = vmatmul.mubr.msk.f32.gmra.mxu0 %vm428_vm2, %v2023_v25  ;;  %2102 = vmatprep.subr.mxu0 %v1581_v34 }
 0x275   : > { %2103 = vmatpush3.msra.mxu0 %v1581_v34 }
 0x276   : > { %v1131_v48 = vpop.f32.mrf.mxu0  ;;  %2104 = vmatprep.subr.mxu0 %v1580_v35 }
 0x277   : > { %2076 = vmatprep.mubr.msk.f32.mxu0 %vm428_vm2, %v1131_v48  ;;  %2105 = vmatpush3.msra.mxu0 %v1580_v35 }
 0x278   : > { %v2065_v49 = vpop.f32.mrf.mxu1  ;;  %2077 = vmatmul.mubr.msk.f32.gmra.mxu0 %vm428_vm2, %v2030_v28  ;;  %2106 = vmatprep.subr.mxu0 %v1579_v36 }
 0x279   : > { %2107 = vmatpush3.msra.mxu0 %v1579_v36 }
 0x27a   : > { %v1244_v50 = vpop.f32.mrf.mxu1  ;;  %2108 = vmatprep.subr.mxu0 %v1578_v37 }
 0x27b   : > { %2079 = vmatprep.mubr.msk.f32.mxu0 %vm428_vm2, %v1244_v50  ;;  %2109 = vmatpush3.msra.mxu0 %v1578_v37 }
 0x27c   : > { %2080 = vmatmul.mubr.msk.f32.gmra.mxu0 %vm428_vm2, %v2900_v30  ;;  %2110 = vmatprep.subr.mxu0 %v1577_v38  ;;  %v2088_v56 = vpop.f32.mrf.mxu1 }
 0x27d   : > { %2111 = vmatpush3.msra.mxu0 %v1577_v38 }
 0x27e   : > { %2112 = vmatprep.subr.mxu0 %v1576_v39  ;;  %v1490_v57 = vpop.f32.mrf.mxu1 }
 0x27f   : > { %2113 = vmatpush3.msra.mxu0 %v1576_v39 }
 0x280   : > { %2114 = vmatprep.subr.mxu0 %v1575_v40  ;;  %v2091_v58 = vpop.f32.mrf.mxu1 }
 0x281   : > { %2115 = vmatpush3.msra.mxu0 %v1575_v40 }
 0x282   : > { %2116 = vmatprep.subr.mxu0 %v1574_v41  ;;  %v1500_v59 = vpop.f32.mrf.mxu1 }
 0x283   : > { %2117 = vmatpush3.msra.mxu0 %v1574_v41  ;;  %v1921_v41 = vld [vmem:[%s2986_s6] ss:$0 sm:$0xff] }
 0x284   : > { %2118 = vmatprep.subr.mxu0 %v1573_v42  ;;  %v2094_v0 = vpop.f32.mrf.mxu1 }
 0x285   : > { %2119 = vmatpush3.msra.mxu0 %v1573_v42 }
 0x286   : > { %2120 = vmatprep.subr.mxu0 %v1572_v51  ;;  %v1510_v8 = vpop.f32.mrf.mxu1 }
 0x287   : > { %2121 = vmatpush3.msra.mxu0 %v1572_v51 }
 0x288   : > { %2122 = vmatprep.subr.mxu0 %v1571_v52  ;;  %v2097_v17 = vpop.f32.mrf.mxu1 }
 0x289   : > { %2123 = vmatpush3.msra.mxu0 %v1571_v52 }
 0x28a   : > { %2124 = vmatprep.subr.mxu0 %v1570_v53  ;;  %v1520_v27 = vpop.f32.mrf.mxu1 }
 0x28b   : > { %2125 = vmatpush3.msra.mxu0 %v1570_v53 }
 0x28c   : > { %2126 = vmatprep.subr.mxu0 %v1569_v54 }
 0x28d   : > { %2127 = vmatpush3.msra.mxu0 %v1569_v54 }
 0x28e   : > { %2128 = vmatprep.subr.mxu0 %v1568_v55 }
 0x28f   : > { %2129 = vmatpush3.msra.mxu0 %v1568_v55 }
 0x330   : > { %v2072_v60 = vpop.f32.mrf.mxu0 }
 0x331   : > { %v1496_v62 = vadd.f32 %v2088_v56, %v2072_v60 }
 0x332   : > { %v1361_v63 = vpop.f32.mrf.mxu0 }
 0x333   : > { %v1537_v1 = vadd.f32 %v1920_v61, %v1496_v62  ;;  %v1491_v2 = vadd.f32 %v1490_v57, %v1361_v63 }
 0x334   : > { %v2075_v3 = vpop.f32.mrf.mxu0 }
 0x335   : > { %v1536_v4 = vadd.f32 %v1920_v61, %v1491_v2  ;;  %v1506_v5 = vadd.f32 %v2091_v58, %v2075_v3  ;;  %vm1545_vm3 = vcmp.ge.f32.partialorder %v1537_v1, 0.0  ;;  %v1553_v6 = vmul.f32 0.01, %v1537_v1 }
 0x336   : > { %v1371_v7 = vpop.f32.mrf.mxu0 }
 0x337   : > { %v1539_v9 = vadd.f32 %v1920_v61, %v1506_v5  ;;  %v1501_v10 = vadd.f32 %v1500_v59, %v1371_v7  ;;  %vm1544_vm4 = vcmp.ge.f32.partialorder %v1536_v4, 0.0  ;;  %v1552_v11 = vmul.f32 0.01, %v1536_v4 }
 0x338   : > { %v2078_v12 = vpop.f32.mrf.mxu0  ;;  %v1561_v18 = vsel %vm1545_vm3, %v1537_v1, %v1553_v6 }
 0x339   : > { %v1538_v13 = vadd.f32 %v1920_v61, %v1501_v10  ;;  %v1516_v14 = vadd.f32 %v2094_v0, %v2078_v12  ;;  %v1560_v15 = vsel %vm1544_vm4, %v1536_v4, %v1552_v11  ;;  %vm1547_vm5 = vcmp.ge.f32.partialorder %v1539_v9, 0.0 }
 0x33a   : > { %v1381_v16 = vpop.f32.mrf.mxu0  ;;  %2130 = vmatprep.mubr.f32.mxu0 %v1560_v15  ;;  %v1555_v19 = vmul.f32 0.01, %v1539_v9 }
 0x33b   : > { %v1541_v20 = vadd.f32 %v1920_v61, %v1516_v14  ;;  %v1511_v21 = vadd.f32 %v1510_v8, %v1381_v16  ;;  %2131 = vmatmul.mubr.f32.vlgmr.msra.gmra.mxu0 %v1561_v18  ;;  %vm1546_vm6 = vcmp.ge.f32.partialorder %v1538_v13, 0.0  ;;  %v1554_v22 = vmul.f32 0.01, %v1538_v13 }
 0x33c   : > { %v2081_v23 = vpop.f32.mrf.mxu0  ;;  %v1563_v30 = vsel %vm1547_vm5, %v1539_v9, %v1555_v19 }
 0x33d   : > { %v1540_v24 = vadd.f32 %v1920_v61, %v1511_v21  ;;  %v1526_v25 = vadd.f32 %v2097_v17, %v2081_v23  ;;  %vm1549_vm7 = vcmp.ge.f32.partialorder %v1541_v20, 0.0  ;;  %v1557_v26 = vmul.f32 0.01, %v1541_v20 }
 0x33e   : > { %v1391_v28 = vpop.f32.mrf.mxu0  ;;  %v1562_v29 = vsel %vm1546_vm6, %v1538_v13, %v1554_v22 }
 0x33f   : > { %v1543_v31 = vadd.f32 %v1920_v61, %v1526_v25  ;;  %v1521_v32 = vadd.f32 %v1520_v27, %v1391_v28  ;;  %2133 = vmatprep.mubr.f32.mxu0 %v1562_v29  ;;  %vm1548_vm8 = vcmp.ge.f32.partialorder %v1540_v24, 0.0  ;;  %v1556_v33 = vmul.f32 0.01, %v1540_v24 }
 0x340   : > { %2134 = vmatmul.mubr.f32.gmra.mxu0 %v1563_v30  ;;  %v1565_v36 = vsel %vm1549_vm7, %v1541_v20, %v1557_v26 }
 0x341   : > { %v1542_v34 = vadd.f32 %v1920_v61, %v1521_v32  ;;  %v1564_v35 = vsel %vm1548_vm8, %v1540_v24, %v1556_v33  ;;  %v1559_v37 = vmul.f32 0.01, %v1543_v31  ;;  %vm1551_vm10 = vcmp.ge.f32.partialorder %v1543_v31, 0.0 }
 0x342   : > { %2136 = vmatprep.mubr.f32.mxu1 %v1564_v35 }
 0x343   : > { %2137 = vmatmul.mubr.f32.vlgmr.msra.gmra.mxu1 %v1565_v36  ;;  %vm1550_vm9 = vcmp.ge.f32.partialorder %v1542_v34, 0.0  ;;  %v1558_v38 = vmul.f32 0.01, %v1542_v34  ;;  %v1567_v40 = vsel %vm1551_vm10, %v1543_v31, %v1559_v37 }
 0x345   : > { %v1566_v39 = vsel %vm1550_vm9, %v1542_v34, %v1558_v38 }
 0x346   : > { %2139 = vmatprep.mubr.f32.mxu1 %v1566_v39 }
 0x347   : > { %2140 = vmatmul.mubr.f32.gmra.mxu1 %v1567_v40 }
 0x3fb   : > { %v2132_v42 = vpop.f32.mrf.mxu0 }
 0x3fc   : > { %v1663_v43 = vadd.f32 %v2132_v42, %v1921_v41 }
 0x3fd   : > { %v1657_v44 = vpop.f32.mrf.mxu0 }
 0x3fe   : > { %vm1697_vm11 = vcmp.ge.f32.partialorder %v1663_v43, 0.0  ;;  %v1705_v45 = vmul.f32 0.01, %v1663_v43  ;;  %v1658_v46 = vadd.f32 %v1921_v41, %v1657_v44 }
 0x400   : > { %v1713_v47 = vsel %vm1697_vm11, %v1663_v43, %v1705_v45  ;;  %vm1696_vm12 = vcmp.ge.f32.partialorder %v1658_v46, 0.0  ;;  %v1704_v48 = vmul.f32 0.01, %v1658_v46  ;;  %v2135_v49 = vpop.f32.mrf.mxu0 }
 0x401   : > { %1721 = vst [vmem:[%s2920_s11 + $0x8] sm:$0xff] %v1713_v47  ;;  %v1673_v50 = vadd.f32 %v2135_v49, %v1921_v41 }
 0x402   : > { %v1712_v51 = vsel %vm1696_vm12, %v1658_v46, %v1704_v48  ;;  %v1667_v52 = vpop.f32.mrf.mxu0 }
 0x403   : > { %1720 = vst [vmem:[%s2920_s11] sm:$0xff] %v1712_v51  ;;  %vm1699_vm13 = vcmp.ge.f32.partialorder %v1673_v50, 0.0  ;;  %v1707_v53 = vmul.f32 0.01, %v1673_v50  ;;  %v1668_v54 = vadd.f32 %v1921_v41, %v1667_v52  ;;  %v2138_v55 = vpop.f32.mrf.mxu1 }
 0x404   : > { %v1683_v56 = vadd.f32 %v2138_v55, %v1921_v41 }
 0x405   : > { %v1715_v57 = vsel %vm1699_vm13, %v1673_v50, %v1707_v53  ;;  %vm1698_vm14 = vcmp.ge.f32.partialorder %v1668_v54, 0.0  ;;  %v1706_v58 = vmul.f32 0.01, %v1668_v54  ;;  %v1677_v59 = vpop.f32.mrf.mxu1 }
 0x406   : > { %1723 = vst [vmem:[%s2920_s11 + $0x18] sm:$0xff] %v1715_v57  ;;  %vm1701_vm15 = vcmp.ge.f32.partialorder %v1683_v56, 0.0  ;;  %v1709_v60 = vmul.f32 0.01, %v1683_v56  ;;  %v1678_v61 = vadd.f32 %v1921_v41, %v1677_v59 }
 0x407   : > { %v1714_v62 = vsel %vm1698_vm14, %v1668_v54, %v1706_v58  ;;  %v2141_v63 = vpop.f32.mrf.mxu1 }
 0x408   : > { %1722 = vst [vmem:[%s2920_s11 + $0x10] sm:$0xff] %v1714_v62  ;;  %v1717_v0 = vsel %vm1701_vm15, %v1683_v56, %v1709_v60  ;;  %vm1700_vm0 = vcmp.ge.f32.partialorder %v1678_v61, 0.0  ;;  %v1708_v1 = vmul.f32 0.01, %v1678_v61  ;;  %v1693_v2 = vadd.f32 %v2141_v63, %v1921_v41 }
 0x409   : > { %1725 = vst [vmem:[%s2920_s11 + $0x28] sm:$0xff] %v1717_v0  ;;  %v1687_v3 = vpop.f32.mrf.mxu1 }
 0x40a   : > { %v1716_v4 = vsel %vm1700_vm0, %v1678_v61, %v1708_v1  ;;  %vm1703_vm1 = vcmp.ge.f32.partialorder %v1693_v2, 0.0  ;;  %v1711_v5 = vmul.f32 0.01, %v1693_v2  ;;  %v1688_v6 = vadd.f32 %v1921_v41, %v1687_v3 }
 0x40b   : > { %1724 = vst [vmem:[%s2920_s11 + $0x20] sm:$0xff] %v1716_v4 }
 0x40c   : > { %v1719_v7 = vsel %vm1703_vm1, %v1693_v2, %v1711_v5  ;;  %vm1702_vm2 = vcmp.ge.f32.partialorder %v1688_v6, 0.0  ;;  %v1710_v8 = vmul.f32 0.01, %v1688_v6 }
 0x40d   : > { %1727 = vst [vmem:[%s2920_s11 + $0x38] sm:$0xff] %v1719_v7 }
 0x40e   : > { %v1718_v9 = vsel %vm1702_vm2, %v1688_v6, %v1710_v8 }
 0x40f   : > { %1726 = vst [vmem:[%s2920_s11 + $0x30] sm:$0xff] %v1718_v9 }
 0x410   : > { %2424 = shalt.err (!%p2421_p6)
}
 0x411   : > { %s2425_s19 = scalar_lea.hbm %s2935_s16, 1024  ;;  %s2429_s23 = scalar_lea.hbm %s2987_s7, 2048 }
 0x412   : > { %p2426_p7 = scmp.ne.s32.totalorder %s2935_s16, %s2425_s19  ;;  %p2430_p11 = scmp.lt.s32.totalorder %s2935_s16, %s2987_s7 }
 0x413   : > { %p2431_p3 = scmp.lt.s32.totalorder %s2429_s23, %s2425_s19 }
 0x414   : > { %p2427_p5 = pnand %p2426_p7, %p3019_p13 }
 0x415   : > { %p2432_p12 = por %p2431_p3, %p2430_p11 }
 0x416   : > { %p2428_p8 = pneg %p2427_p5 }
 0x418   : > { %p2433_p9 = pnand %p2432_p12, %p2428_p8 }
 0x41a   : > { %2436 = shalt.err (!%p2433_p9)
}
 0x41b   : > { %s2497_s5 = smov 128   ;;  %s2498_s17 = smov 8  }
 0x41c   : > { %2190 = dma.vmem_to_hbm [thread:$0]  (%p3019_p13), %s2929_s18, 1024, %s2935_s16, %s1729_s28, %s2497_s5, %s2497_s5, %s2498_s17  }
 0x41d PF: > { %s1758_s15 = sand.u32 1, %s2475_s24   ;;  %p3020_p0 = scmp.ne.s32.totalorder %s3002_s8, 0 }
 0x41e   : > { %p3021_p2 = scmp.ge.s32.totalorder %s2487_s27, 2  ;;  %s1759_s11 = scalar_lea.sflag [#allocation4], %s1758_s15 }
 0x420   : > { %p2210_p10 = pnand %p3021_p2, %p3020_p0 }
 0x422   : > { %p2211_p1 = pneg %p2210_p10 }
 0x424   : > { %2470 = dma.done.wait (%p2211_p1), %s1759_s11, 1024  }
 0x425   : > { %2472 = vsyncadd (%p2211_p1), %s1759_s11, 4294966272  ;;  %s3022_s2 = sld [smem:[#allocation17_spill]]  ;;  %p24_p4 = scmp.ge.s32.totalorder %s2628_s14, 4  }
 0x426   : > { %s3023_s26 = sld [smem:[#allocation18_spill]]  ;;  %s3024_s24 = smov %s2479_s25 }
 0x427   : > { %s3026_s27 = smov %s2628_s14  ;;  %26 = sbr.rel (!%p24_p4) target bundleno = 13 (0xd), region = 118 }
 0x42b   : > { %s3025_s25 = smov %s3022_s2 }
 0x42c   :  { %1764 = vsyncpa [#allocation3], 1 }
 0x42d   :  { %1766 = vsyncpa [#allocation3 + $0x1], 1 }
 0x42e   :  { %1767 = vsyncpa [#allocation6], 1 }
 0x42f   :  { %1769 = vsyncpa [#allocation6 + $0x1], 1 }
 0x430   :  { %1770 = vsyncpa [#allocation9], 1 }
 0x431   :  { %1771 = vsyncpa [#allocation4], 1 }
 0x432   :  { %1773 = vsyncpa [#allocation4 + $0x1], 1 }

</bundles_post_ra>
